<compile_context>
chip_gen: v6e
topology: v6e:2x2x1
jax: 0.10.0
libtpu: 0.0.40
codegen_flags: <defaults>
</compile_context>

<pallas_src>
import functools

import jax
import jax.numpy as jnp
from jax.experimental import pallas as pl
from jax.experimental.pallas import tpu as pltpu

LANE = 128        # TPU lane width: one lane-dense output slab per row.
HALF = LANE // 2  # mean lives in lanes [0, 64), std in lanes [64, 128).


def _round_up(n, m):
    return ((n + m - 1) // m) * m


def policy_kernel(x_ref, w1_ref, b1_ref, w23_ref, b23_ref, out_ref):
    # fc1 + ReLU (MXU matmul, f32 accumulation; epilogue stays f32 -> v5e friendly)
    h = jnp.maximum(
        jnp.dot(x_ref[...], w1_ref[...], preferred_element_type=jnp.float32)
        + b1_ref[...],
        0.0,
    )                                                            # (TM, H)

    # Fused heads: ONE matmul producing [ mean (64 lanes) | log_std (64 lanes) ].
    z = jnp.dot(h, w23_ref[...], preferred_element_type=jnp.float32) + b23_ref[...]

    # Apply clamp+exp only where the std half lives, but keep a single unmasked
    # 128-wide store: per-lane select with an iota mask (VPU); exp goes to the EUP
    # (its own bundle slot), so computing it on the discarded mean lanes is free.
    lane = jax.lax.broadcasted_iota(jnp.int32, z.shape, dimension=1)
    std = jnp.exp(jnp.clip(z, -2.0, 2.0))
    out_ref[...] = jnp.where(lane < HALF, z, std)                # (TM, 128) lane-dense


def pack_params(params):
    """ONE-TIME packing (hoisted out of the per-step forward path).

    Fuses the two heads into a single lane-dense (hidden, 128) weight and (1, 128)
    bias: mean head -> lanes [0, 64), log_std head -> lanes [64, 128)."""
    w1, b1 = params["w1"], params["b1"]
    w2, b2 = params["w2"], params["b2"]
    w3, b3 = params["w3"], params["b3"]
    out_dim = w2.shape[1]
    assert out_dim <= HALF, f"out_dim={out_dim} must be <= {HALF} for the packed slab"
    pad = HALF - out_dim
    w23 = jnp.concatenate(
        [jnp.pad(w2, ((0, 0), (0, pad))), jnp.pad(w3, ((0, 0), (0, pad)))], axis=1
    )                                                            # (H, 128)
    b23 = jnp.concatenate(
        [jnp.pad(b2, ((0, 0), (0, pad))), jnp.pad(b3, ((0, 0), (0, pad)))], axis=1
    )                                                            # (1, 128)
    return w1, b1, w23, b23, out_dim


@functools.partial(jax.jit, static_argnames=("out_dim", "block_batch"))
def policy_forward(x, w1, b1, w23, b23, *, out_dim, block_batch=1024):
    """x: (batch, input_dim) f32. Weights come pre-packed from pack_params()."""
    batch, input_dim = x.shape
    hidden = w1.shape[1]

    # Batch tile: multiple of 8 sublanes; capped so (a) large batches always give
    # >= 2 grid steps -> both TensorCores used on v7x via "parallel", and (b) the
    # per-block footprint stays a few MiB (safe on v5e/v6e/v7x scoped-VMEM budgets).
    tm = min(block_batch, _round_up(pl.cdiv(batch, 2), 8))
    tm = max(tm, 8)
    b_pad = _round_up(batch, tm)
    if b_pad != batch:
        # Padded rows are zero-driven; they flow through exp harmlessly and are
        # sliced away below.
        x = jnp.pad(x, ((0, b_pad - batch), (0, 0)))

    out = pl.pallas_call(
        policy_kernel,
        out_shape=jax.ShapeDtypeStruct((b_pad, LANE), jnp.float32),
        grid=(b_pad // tm,),
        in_specs=[
            pl.BlockSpec((tm, input_dim), lambda i: (i, 0)),     # x: blocked over batch
            pl.BlockSpec((input_dim, hidden), lambda i: (0, 0)),  # weights stay resident
            pl.BlockSpec((1, hidden), lambda i: (0, 0)),
            pl.BlockSpec((hidden, LANE), lambda i: (0, 0)),
            pl.BlockSpec((1, LANE), lambda i: (0, 0)),
        ],
        out_specs=pl.BlockSpec((tm, LANE), lambda i: (i, 0)),
        compiler_params=pltpu.CompilerParams(
            dimension_semantics=("parallel",),                   # megacore / 2 TCs on v7x
            vmem_limit_bytes=32 * 1024 * 1024,
        ),
    )(x, w1, b1, w23, b23)

    # Wrapper-side slicing: fused under jit -> free layout plumbing, not compute.
    mean = out[:batch, :out_dim]
    std = out[:batch, HALF:HALF + out_dim]
    return mean, std


def init_params(key, input_dim, output_dim, hidden_dim=32):
    """Deterministic PyTorch-style Linear init: U(-1/sqrt(fan_in), 1/sqrt(fan_in)).
    Weights stored pre-transposed as (in_features, out_features)."""
    ks = jax.random.split(key, 6)

    def linear(kw, kb, fan_in, fan_out):
        bound = 1.0 / jnp.sqrt(jnp.float32(fan_in))
        w = jax.random.uniform(kw, (fan_in, fan_out), jnp.float32, -bound, bound)
        b = jax.random.uniform(kb, (1, fan_out), jnp.float32, -bound, bound)
        return w, b

    w1, b1 = linear(ks[0], ks[1], input_dim, hidden_dim)
    w2, b2 = linear(ks[2], ks[3], hidden_dim, output_dim)
    w3, b3 = linear(ks[4], ks[5], hidden_dim, output_dim)
    return {"w1": w1, "b1": b1, "w2": w2, "b2": b2, "w3": w3, "b3": b3}


def policy_forward_ref(x, p):
    h = jnp.maximum(x @ p["w1"] + p["b1"], 0.0)
    mean = h @ p["w2"] + p["b2"]
    log_std = jnp.clip(h @ p["w3"] + p["b3"], -2.0, 2.0)
    return mean, jnp.exp(log_std)


if __name__ == "__main__":
    key = jax.random.PRNGKey(0)
    k_param, k_x = jax.random.split(key)

    batch, input_dim, output_dim, hidden_dim = 2, 4, 2, 32

    params = init_params(k_param, input_dim, output_dim, hidden_dim)
    # Param packing hoisted: done ONCE here, not inside the per-step forward path.
    w1, b1, w23, b23, out_dim = pack_params(params)

    x = jax.random.normal(k_x, (batch, input_dim), jnp.float32)
    mean, std = jax.block_until_ready(
        policy_forward(x, w1, b1, w23, b23, out_dim=out_dim)
    )

    mean_ref, std_ref = policy_forward_ref(x, params)
    assert mean.shape == (batch, output_dim) and std.shape == (batch, output_dim)
    assert jnp.allclose(mean, mean_ref, atol=1e-5, rtol=1e-5)
    assert jnp.allclose(std, std_ref, atol=1e-5, rtol=1e-5)
    assert bool(jnp.all(std > 0.0))

    # Larger-batch sanity check: >= 2 grid steps (exercises batch blocking,
    # padded tail rows, and the v7x two-TensorCore sharding path).
    xb = jax.random.normal(jax.random.PRNGKey(1), (1000, input_dim), jnp.float32)
    mb, sb = jax.block_until_ready(
        policy_forward(xb, w1, b1, w23, b23, out_dim=out_dim)
    )
    mbr, sbr = policy_forward_ref(xb, params)
    assert jnp.allclose(mb, mbr, atol=1e-5, rtol=1e-5)
    assert jnp.allclose(sb, sbr, atol=1e-5, rtol=1e-5)

    print("KERNEL_OK")
</pallas_src>

<mosaic_0001>
module attributes {stable_mosaic.version = 11 : i64} {
  func.func @policy_kernel(%arg0: i32, %arg1: memref<8x4xf32, #tpu.memory_space<vmem>>, %arg2: memref<4x32xf32, #tpu.memory_space<vmem>>, %arg3: memref<1x32xf32, #tpu.memory_space<vmem>>, %arg4: memref<32x128xf32, #tpu.memory_space<vmem>>, %arg5: memref<1x128xf32, #tpu.memory_space<vmem>>, %arg6: memref<8x128xf32, #tpu.memory_space<vmem>>) attributes {dimension_semantics = [#tpu.dimension_semantics<parallel>], iteration_bounds = array<i64: 1>, scalar_prefetch = 0 : i64, scratch_operands = 0 : i64, tpu.core_type = #tpu.core_type<tc>, window_params = [{transform_indices = @transform_0, window_bounds = array<i64: 8, 4>}, {pipeline_mode = #tpu.pipeline_mode<synchronous>, transform_indices = @transform_1, window_bounds = array<i64: 4, 32>}, {pipeline_mode = #tpu.pipeline_mode<synchronous>, transform_indices = @transform_2, window_bounds = array<i64: 1, 32>}, {pipeline_mode = #tpu.pipeline_mode<synchronous>, transform_indices = @transform_3, window_bounds = array<i64: 32, 128>}, {pipeline_mode = #tpu.pipeline_mode<synchronous>, transform_indices = @transform_4, window_bounds = array<i64: 1, 128>}, {transform_indices = @transform_5, window_bounds = array<i64: 8, 128>}]} {
    %c0 = arith.constant 0 : index
    %c0_0 = arith.constant 0 : index
    %0 = vector.load %arg1[%c0, %c0_0] : memref<8x4xf32, #tpu.memory_space<vmem>>, vector<8x4xf32>
    %c0_1 = arith.constant 0 : index
    %c0_2 = arith.constant 0 : index
    %1 = vector.load %arg2[%c0_1, %c0_2] : memref<4x32xf32, #tpu.memory_space<vmem>>, vector<4x32xf32>
    %cst = arith.constant dense<0.000000e+00> : vector<8x32xf32>
    %2 = tpu.matmul %0, %1, %cst {dimension_numbers = #tpu.dot_dimension_numbers<[1], [0], [0], [1], [0, 0, 1, 1], [], []>} : vector<8x4xf32>, vector<4x32xf32>, vector<8x32xf32> -> vector<8x32xf32>
    %c0_3 = arith.constant 0 : index
    %c0_4 = arith.constant 0 : index
    %3 = vector.load %arg3[%c0_3, %c0_4] : memref<1x32xf32, #tpu.memory_space<vmem>>, vector<1x32xf32>
    %4 = vector.broadcast %3 : vector<1x32xf32> to vector<8x32xf32>
    %5 = arith.addf %2, %4 : vector<8x32xf32>
    %cst_5 = arith.constant 0.000000e+00 : f32
    %6 = vector.broadcast %cst_5 : f32 to vector<8x32xf32>
    %7 = arith.maximumf %5, %6 : vector<8x32xf32>
    %c0_6 = arith.constant 0 : index
    %c0_7 = arith.constant 0 : index
    %8 = vector.load %arg4[%c0_6, %c0_7] : memref<32x128xf32, #tpu.memory_space<vmem>>, vector<32x128xf32>
    %cst_8 = arith.constant dense<0.000000e+00> : vector<8x128xf32>
    %9 = tpu.matmul %7, %8, %cst_8 {dimension_numbers = #tpu.dot_dimension_numbers<[1], [0], [0], [1], [0, 0, 1, 1], [], []>} : vector<8x32xf32>, vector<32x128xf32>, vector<8x128xf32> -> vector<8x128xf32>
    %c0_9 = arith.constant 0 : index
    %c0_10 = arith.constant 0 : index
    %10 = vector.load %arg5[%c0_9, %c0_10] : memref<1x128xf32, #tpu.memory_space<vmem>>, vector<1x128xf32>
    %11 = vector.broadcast %10 : vector<1x128xf32> to vector<8x128xf32>
    %12 = arith.addf %9, %11 : vector<8x128xf32>
    %13 = tpu.iota {dimensions = array<i32: 1>} : vector<8x128xi32>
    %cst_11 = arith.constant -2.000000e+00 : f32
    %cst_12 = arith.constant 2.000000e+00 : f32
    %14 = vector.broadcast %cst_11 : f32 to vector<8x128xf32>
    %15 = arith.maximumf %14, %12 : vector<8x128xf32>
    %16 = vector.broadcast %cst_12 : f32 to vector<8x128xf32>
    %17 = arith.minimumf %16, %15 : vector<8x128xf32>
    %18 = math.exp %17 : vector<8x128xf32>
    %c64_i32 = arith.constant 64 : i32
    %19 = vector.broadcast %c64_i32 : i32 to vector<8x128xi32>
    %20 = arith.cmpi slt, %13, %19 : vector<8x128xi32>
    %21 = arith.select %20, %12, %18 : vector<8x128xi1>, vector<8x128xf32>
    %c0_13 = arith.constant 0 : index
    %c0_14 = arith.constant 0 : index
    %22 = vector.load %arg6[%c0_13, %c0_14] : memref<8x128xf32, #tpu.memory_space<vmem>>, vector<8x128xf32>
    tpu.vector_store %arg6[%c0_13, %c0_14], %21 {strides = array<i32>} : memref<8x128xf32, #tpu.memory_space<vmem>>, vector<8x128xf32>,
    return
  }
  func.func @transform_0(%arg0: i32) -> (i32, i32) {
    %c0_i32 = arith.constant 0 : i32
    %c0_i32_0 = arith.constant 0 : i32
    return %arg0, %c0_i32 : i32, i32
  }
  func.func @transform_1(%arg0: i32) -> (i32, i32) {
    %c0_i32 = arith.constant 0 : i32
    %c0_i32_0 = arith.constant 0 : i32
    %c0_i32_1 = arith.constant 0 : i32
    return %c0_i32, %c0_i32_0 : i32, i32
  }
  func.func @transform_2(%arg0: i32) -> (i32, i32) {
    %c0_i32 = arith.constant 0 : i32
    %c0_i32_0 = arith.constant 0 : i32
    %c0_i32_1 = arith.constant 0 : i32
    return %c0_i32, %c0_i32_0 : i32, i32
  }
  func.func @transform_3(%arg0: i32) -> (i32, i32) {
    %c0_i32 = arith.constant 0 : i32
    %c0_i32_0 = arith.constant 0 : i32
    %c0_i32_1 = arith.constant 0 : i32
    return %c0_i32, %c0_i32_0 : i32, i32
  }
  func.func @transform_4(%arg0: i32) -> (i32, i32) {
    %c0_i32 = arith.constant 0 : i32
    %c0_i32_0 = arith.constant 0 : i32
    %c0_i32_1 = arith.constant 0 : i32
    return %c0_i32, %c0_i32_0 : i32, i32
  }
  func.func @transform_5(%arg0: i32) -> (i32, i32) {
    %c0_i32 = arith.constant 0 : i32
    %c0_i32_0 = arith.constant 0 : i32
    return %arg0, %c0_i32 : i32, i32
  }
}

</mosaic_0001>

<bundles_post_ra>
// kernel: policy_forward.1
= control target key start
LH: loop header
LB: loop body
LE: loop exit
PB: predicated region body
PF: predicated region fallthrough
CT: control target
= control target key end

     0   :  { %10 = vsyncpa [#allocation3], 0  ;;  %s279_s18 = smov [#allocation2]   ;;  %s332_s0 = inlined_call_operand.vmem [shape: f32[8,4], index: 0, kind: input, shape index: {}]   ;;  %s333_s1 = inlined_call_operand.vmem [shape: f32[4,32], index: 1, kind: input, shape index: {}]   ;;  %s334_s2 = inlined_call_operand.vmem [shape: f32[1,32], index: 2, kind: input, shape index: {}]   ;;  %s335_s3 = inlined_call_operand.hbm [shape: f32[32,128], index: 3, kind: input, shape index: {}]   ;;  %s336_s4 = inlined_call_operand.vmem [shape: f32[1,128], index: 4, kind: input, shape index: {}]   ;;  %s337_s5 = inlined_call_operand.vmem [shape: f32[8,128], index: 5, kind: output, shape index: {}]  }
   0x1   :  { %s22_s19 = sshll.u32 %s279_s18, 4  ;;  %s23_s19 = int_to_ptr.vmem [resolvable:$true] %s22_s19 }
   0x2   :  { %s265_s20 = scalar_lea.vmem %s23_s19, 512  ;;  %p270_p1 = scmp.lt.s32.totalorder %s23_s19, %s23_s19 }
   0x3   :  { %p266_p0 = scmp.ne.s32.totalorder %s23_s19, %s265_s20  ;;  %p271_p2 = scmp.lt.s32.totalorder %s265_s20, %s265_s20 }
   0x5   :  { %p272_p3 = por %p271_p2, %p270_p1 }
   0x7   :  { %p273_p4 = pnand %p272_p3, %p266_p0 }
   0x9   :  { %276 = shalt.err (!%p273_p4)
}
   0xa   :  { %s280_s21 = smov 128   ;;  %s281_s22 = smov 8  }
   0xb   :  { %28 = dma.hbm_to_vmem [thread:$0]  %s335_s3, 512, %s23_s19, [#allocation3], %s280_s21, %s280_s21, %s281_s22  }
   0xc   :  { %277 = dma.done.wait [#allocation3], 512  }
   0xd   :  { %278 = vsyncadd [#allocation3], 4294966784  ;;  %v282_v0 = vmov 0.0   ;;  %vm283_vm0 = vmmov 0   ;;  %vm47_vm1 = vcmask 1043456   ;;  %vm43_vm2 = vcmask 31744  }
   0xe   :  { %234 = vmatprep.subr.mxu0 %v282_v0  ;;  %236 = vmatprep.mubr.msk.f32.mxu0 %vm283_vm0, %v282_v0  ;;  %v35_v1 = vld [vmem:[%s333_s1] sm:$0xf]  ;;  %v125_v3 = vld [vmem:[#allocation2 + $0x18] sm:$0xff]  ;;  %v124_v4 = vld [vmem:[#allocation2 + $0x10] sm:$0xff]  ;;  %vm133_vm3 = vcmask 261120   ;;  %v207_v18 = vlaneseq }
   0xf   :  { %239 = vmatprep.subr.mxu1 %v282_v0  ;;  %247 = vmatprep.mubr.msk.f32.mxu1 %vm283_vm0, %v282_v0  ;;  %v34_v2 = vld [vmem:[%s332_s0] sm:$0xff]  ;;  %v123_v5 = vld [vmem:[#allocation2 + $0x8] sm:$0xff] }
  0x10   :  { %235 = vmatpush3.msk.msra.mxu0 %vm47_vm1, %v35_v1  ;;  %240 = vmatpush3.msra.mxu1 %v125_v3  ;;  %v122_v6 = vld [vmem:[#allocation2] sm:$0xff]  ;;  %v208_v19 = vand.u32 127, %v207_v18 }
  0x11   :  { %237 = vmatmul.mubr.msk.f32.vlgmr.msra.gmra.mxu0 %vm43_vm2, %v34_v2  ;;  %241 = vmatprep.subr.mxu1 %v282_v0  ;;  %v221_v7 = vld [vmem:[%s334_s2] ss:$0 sm:$0xff] }
  0x12   :  { %242 = vmatpush3.msra.mxu1 %v124_v4  ;;  %v224_v12 = vld [vmem:[%s336_s4] ss:$0 sm:$0xff]  ;;  %vm213_vm4 = vcmp.lt.s32.totalorder %v208_v19, 64 }
  0x13   :  { %243 = vmatprep.subr.mxu1 %v282_v0 }
  0x14   :  { %244 = vmatpush3.msra.mxu1 %v123_v5 }
  0x15   :  { %245 = vmatprep.subr.mxu1 %v282_v0 }
  0x16   :  { %246 = vmatpush3.msra.mxu1 %v122_v6 }
  0xd1   :  { %v117_v8 = vpop.f32.mrf.mxu0 }
  0xd2   :  { %v118_v9 = vadd.f32 %v221_v7, %v117_v8 }
  0xd3   :  { %v238_v10 = vpop.f32.mrf.mxu0 }
  0xd4   :  { %v121_v11 = vmax.f32 %v118_v9, 0.0 }
  0xd6   :  { %248 = vmatmul.mubr.msk.f32.vlgmr.msra.gmra.mxu1 %vm133_vm3, %v121_v11 }
 0x196   :  { %v203_v13 = vpop.f32.mrf.mxu1 }
 0x197   :  { %v204_v14 = vadd.f32 %v224_v12, %v203_v13 }
 0x198   :  { %v249_v15 = vpop.f32.mrf.mxu1 }
 0x199   :  { %v226_v16 = vclamps-f32 %v204_v14, 2.0 }
 0x19b   :  { %v211_v17 = vmul.f32 1.442695, %v226_v16 }
 0x19d   :  { %255 = vpow2.f32 %v211_v17 }
 0x1aa   :  { %v256_v20 = vpop.eup %255 }
 0x1ab   :  { %v214_v21 = vsel %vm213_vm4, %v204_v14, %v256_v20 }
 0x1ac   :  { %215 = vst [vmem:[%s337_s5] sm:$0xff] %v214_v21 }
 0x1ad   :  { %220 = vsyncpa [#allocation3], 1 }

</bundles_post_ra>
